<compile_context>
chip_gen: v7x
topology: tpu7x:2x2x1
jax: 0.10.0
libtpu: 0.0.40
codegen_flags: <defaults>
</compile_context>

<pallas_src>
import functools

import jax
import jax.numpy as jnp
from jax.experimental import pallas as pl
from jax.experimental.pallas import tpu as pltpu

# Memory-space handle (newer JAX exports MemorySpace; keep a tiny compat fallback).
_MS = getattr(pltpu, "MemorySpace", None) or getattr(pltpu, "TPUMemorySpace")
_VMEM = _MS.VMEM


# -----------------------------------------------------------------------------
# Fused GRU recurrence + MDN head kernel (single invocation, no grid)
# -----------------------------------------------------------------------------
def gru_mdn_kernel(x_ref, w_ih_ref, w_hh_ref, b_i_ref, b_hn_ref,
                   w_hz_ref, b_hz_ref, w_head_ref, b_head_ref,
                   out_ref, *, B, S, H, G, O):
    H2 = 2 * H
    GO = G * O

    # ---- hoisted input-path matmul: all time steps at once (M = S*B) --------
    # x_ref:    (S*B, F) time-major, bf16
    # w_ih_ref: (F, 3H)  gate order r|z|n, bf16
    # b_i_ref:  (1, 3H)  f32 = [b_ir+b_hr, b_iz+b_hz, b_in]
    gi_all = jnp.dot(x_ref[...], w_ih_ref[...],
                     preferred_element_type=jnp.float32) + b_i_ref[...]       # (S*B, 3H) f32

    # ---- hoisted loop-invariant loads / broadcasts ---------------------------
    w_hh = w_hh_ref[...]                                                      # (H, 3H) bf16
    b_hn = jnp.broadcast_to(b_hn_ref[...], (B, H))                            # (B, H)  f32

    # ---- t = 0: h == 0, so the h-path matmul is skipped entirely -------------
    gi0 = gi_all[0:B, :]
    rz = jax.nn.sigmoid(gi0[:, 0:H2])          # single full-vreg (128-lane) EUP call
    r = rz[:, 0:H]
    z = rz[:, H:H2]
    n = jnp.tanh(gi0[:, H2:] + r * b_hn)
    h = (1.0 - z) * n                          # z * h_prev == 0

    # ---- remaining unrolled GRU steps (PyTorch GRUCell semantics) ------------
    for t in range(1, S):                      # static, fully unrolled (S=8)
        gi = gi_all[t * B:(t + 1) * B, :]      # (B, 3H) aligned sublane slice
        gh = jnp.dot(h.astype(jnp.bfloat16), w_hh,
                     preferred_element_type=jnp.float32)                      # (B, 3H) f32
        rz = jax.nn.sigmoid(gi[:, 0:H2] + gh[:, 0:H2])   # fused r|z, full-vreg EUP
        r = rz[:, 0:H]
        z = rz[:, H:H2]
        n = jnp.tanh(gi[:, H2:] + r * (gh[:, H2:] + b_hn))
        h = (1.0 - z) * n + z * h

    # ---- MDN head (GRU output projection pre-folded into w_hz) ---------------
    zz = jnp.tanh(jnp.dot(h.astype(jnp.bfloat16), w_hz_ref[...],
                          preferred_element_type=jnp.float32) + b_hz_ref[...])    # (B, Fd)
    head = jnp.dot(zz.astype(jnp.bfloat16), w_head_ref[...],
                   preferred_element_type=jnp.float32) + b_head_ref[...]          # (B, G+2*G*O)

    # softmax over mixture logits
    logits = head[:, 0:G]
    logits = logits - jnp.max(logits, axis=-1, keepdims=True)
    e = jnp.exp(logits)
    pi = e / jnp.sum(e, axis=-1, keepdims=True)

    # ---- single lane-dense padded store: [pi | mu | sigma | 0-pad] -----------
    pad = out_ref.shape[1] - (G + 2 * GO)
    packed = jnp.concatenate(
        [pi,
         head[:, G:G + GO],
         jnp.exp(head[:, G + GO:]),
         jnp.zeros((B, pad), jnp.float32)], axis=-1)
    out_ref[...] = packed


# -----------------------------------------------------------------------------
# Wrapper: offline parameter folding + single pallas_call + output unpacking
# -----------------------------------------------------------------------------
def fold_params(p):
    """Concatenate/fold parameters into the layout the fused kernel expects."""
    # MXU operands in bf16; biases stay f32 (added after the f32-accumulated dot).
    w_ih = jnp.concatenate([p["w_ih"][0], p["w_ih"][1], p["w_ih"][2]],
                           axis=1).astype(jnp.bfloat16)                       # (F, 3H)
    w_hh = jnp.concatenate([p["w_hh"][0], p["w_hh"][1], p["w_hh"][2]],
                           axis=1).astype(jnp.bfloat16)                       # (H, 3H)
    b_i = jnp.concatenate([p["b_ih"][0] + p["b_hh"][0],
                           p["b_ih"][1] + p["b_hh"][1],
                           p["b_ih"][2]], axis=1).astype(jnp.float32)         # (1, 3H)
    b_hn = p["b_hh"][2].astype(jnp.float32)                                   # (1, H)
    # fold w_fc (H,O) into the MDN hidden layer w_h (O,Fd): exact (no nonlinearity between)
    w_hz = (p["w_fc"] @ p["w_h"]).astype(jnp.bfloat16)                        # (H, Fd)
    b_hz = (p["b_fc"] @ p["w_h"] + p["b_h"]).astype(jnp.float32)              # (1, Fd)
    # concatenate the three head matrices: [pi | mu | sigma]
    w_head = jnp.concatenate([p["w_pi"], p["w_mu"], p["w_sg"]],
                             axis=1).astype(jnp.bfloat16)                     # (Fd, G+2*G*O)
    b_head = jnp.concatenate([p["b_pi"], p["b_mu"], p["b_sg"]],
                             axis=1).astype(jnp.float32)                      # (1, G+2*G*O)
    return dict(w_ih=w_ih, w_hh=w_hh, b_i=b_i, b_hn=b_hn,
                w_hz=w_hz, b_hz=b_hz, w_head=w_head, b_head=b_head)


def gru_mdn_forward(params, x, gamma, output_dim):
    # x: (batch, seq_len, feature_dim)
    B, S, F = x.shape
    H = params["w_hh"].shape[-1]
    G, O = gamma, output_dim
    out_w = 128 * pl.cdiv(G + 2 * G * O, 128)   # lane-dense padded output width

    fp = fold_params(params)
    # time-major flatten so per-step GI slices are contiguous, tile-aligned inside the kernel
    x_tm = jnp.transpose(x, (1, 0, 2)).reshape(S * B, F).astype(jnp.bfloat16)

    vmem_spec = pl.BlockSpec(memory_space=_VMEM)
    packed = pl.pallas_call(
        functools.partial(gru_mdn_kernel, B=B, S=S, H=H, G=G, O=O),
        out_shape=jax.ShapeDtypeStruct((B, out_w), jnp.float32),
        in_specs=[vmem_spec] * 9,
        out_specs=vmem_spec,
    )(x_tm, fp["w_ih"], fp["w_hh"], fp["b_i"], fp["b_hn"],
      fp["w_hz"], fp["b_hz"], fp["w_head"], fp["b_head"])

    pi = packed[:, :G]
    mu = packed[:, G:G + G * O].reshape(B, G, O)
    sigma = packed[:, G + G * O:G + 2 * G * O].reshape(B, G, O)
    return mu, sigma, pi


# -----------------------------------------------------------------------------
# Parameter construction (deterministic)
# -----------------------------------------------------------------------------
def init_params(key, feature_dim, output_dim, gamma, hidden_dim=64):
    ks = jax.random.split(key, 14)
    u = lambda k, shape, s: jax.random.uniform(k, shape, jnp.float32, -s, s)
    sh = 1.0 / jnp.sqrt(hidden_dim)
    sf = 1.0 / jnp.sqrt(feature_dim)
    so = 1.0 / jnp.sqrt(output_dim)
    return {
        # GRU cell: gate order (r, z, n)
        "w_ih": u(ks[0], (3, feature_dim, hidden_dim), sh),
        "w_hh": u(ks[1], (3, hidden_dim, hidden_dim), sh),
        "b_ih": u(ks[2], (3, 1, hidden_dim), sh),
        "b_hh": u(ks[3], (3, 1, hidden_dim), sh),
        # GRU output projection hidden -> output_dim
        "w_fc": u(ks[4], (hidden_dim, output_dim), sh),
        "b_fc": u(ks[5], (1, output_dim), sh),
        # MDN head: output_dim -> feature_dim (hidden) -> {pi, mu, sigma}
        "w_h": u(ks[6], (output_dim, feature_dim), so),
        "b_h": u(ks[7], (1, feature_dim), so),
        "w_pi": u(ks[8], (feature_dim, gamma), sf),
        "b_pi": u(ks[9], (1, gamma), sf),
        "w_mu": u(ks[10], (feature_dim, gamma * output_dim), sf),
        "b_mu": u(ks[11], (1, gamma * output_dim), sf),
        "w_sg": u(ks[12], (feature_dim, gamma * output_dim), sf),
        "b_sg": u(ks[13], (1, gamma * output_dim), sf),
    }


if __name__ == "__main__":
    batch = 8
    input_dim = 8        # sequence length
    feature_dim = 16
    output_dim = 4
    gamma = 5

    key = jax.random.PRNGKey(0)
    k_param, k_x = jax.random.split(key)
    params = init_params(k_param, feature_dim, output_dim, gamma)
    x = jax.random.normal(k_x, (batch, input_dim, feature_dim), jnp.float32)

    mu, sigma, weights = gru_mdn_forward(params, x, gamma, output_dim)
    jax.block_until_ready((mu, sigma, weights))

    assert mu.shape == (batch, gamma, output_dim)
    assert sigma.shape == (batch, gamma, output_dim)
    assert weights.shape == (batch, gamma)
    assert bool(jnp.all(sigma > 0))
    assert bool(jnp.allclose(jnp.sum(weights, axis=-1), 1.0, atol=1e-5))

    print("KERNEL_OK")
</pallas_src>

<mosaic_0001>
module attributes {stable_mosaic.version = 11 : i64} {
  func.func @gru_mdn_kernel(%arg0: memref<64x16xbf16, #tpu.memory_space<vmem>>, %arg1: memref<16x192xbf16, #tpu.memory_space<vmem>>, %arg2: memref<64x192xbf16, #tpu.memory_space<vmem>>, %arg3: memref<1x192xf32, #tpu.memory_space<vmem>>, %arg4: memref<1x64xf32, #tpu.memory_space<vmem>>, %arg5: memref<64x16xbf16, #tpu.memory_space<vmem>>, %arg6: memref<1x16xf32, #tpu.memory_space<vmem>>, %arg7: memref<16x45xbf16, #tpu.memory_space<vmem>>, %arg8: memref<1x45xf32, #tpu.memory_space<vmem>>, %arg9: memref<8x128xf32, #tpu.memory_space<vmem>>) attributes {dimension_semantics = [], scalar_prefetch = 0 : i64, scratch_operands = 0 : i64, tpu.core_type = #tpu.core_type<tc>} {
    %c0 = arith.constant 0 : index
    %c0_0 = arith.constant 0 : index
    %0 = vector.load %arg0[%c0, %c0_0] : memref<64x16xbf16, #tpu.memory_space<vmem>>, vector<64x16xbf16>
    %c0_1 = arith.constant 0 : index
    %c0_2 = arith.constant 0 : index
    %1 = vector.load %arg1[%c0_1, %c0_2] : memref<16x192xbf16, #tpu.memory_space<vmem>>, vector<16x192xbf16>
    %cst = arith.constant dense<0.000000e+00> : vector<64x192xf32>
    %2 = tpu.matmul %0, %1, %cst {dimension_numbers = #tpu.dot_dimension_numbers<[1], [0], [0], [1], [0, 0, 1, 1], [], []>} : vector<64x16xbf16>, vector<16x192xbf16>, vector<64x192xf32> -> vector<64x192xf32>
    %c0_3 = arith.constant 0 : index
    %c0_4 = arith.constant 0 : index
    %3 = vector.load %arg3[%c0_3, %c0_4] : memref<1x192xf32, #tpu.memory_space<vmem>>, vector<1x192xf32>
    %4 = vector.broadcast %3 : vector<1x192xf32> to vector<64x192xf32>
    %5 = arith.addf %2, %4 : vector<64x192xf32>
    %c0_5 = arith.constant 0 : index
    %c0_6 = arith.constant 0 : index
    %6 = vector.load %arg2[%c0_5, %c0_6] : memref<64x192xbf16, #tpu.memory_space<vmem>>, vector<64x192xbf16>
    %c0_7 = arith.constant 0 : index
    %c0_8 = arith.constant 0 : index
    %7 = vector.load %arg4[%c0_7, %c0_8] : memref<1x64xf32, #tpu.memory_space<vmem>>, vector<1x64xf32>
    %8 = vector.shape_cast %7 : vector<1x64xf32> to vector<1x64xf32>
    %9 = vector.broadcast %8 : vector<1x64xf32> to vector<8x64xf32>
    %10 = vector.extract_strided_slice %5 {offsets = [0, 0], sizes = [8, 192], strides = [1, 1]} : vector<64x192xf32> to vector<8x192xf32>
    %11 = vector.extract_strided_slice %10 {offsets = [0, 0], sizes = [8, 128], strides = [1, 1]} : vector<8x192xf32> to vector<8x128xf32>
    %12 = arith.negf %11 : vector<8x128xf32>
    %13 = math.exp %12 : vector<8x128xf32>
    %cst_9 = arith.constant 1.000000e+00 : f32
    %14 = vector.broadcast %cst_9 : f32 to vector<8x128xf32>
    %15 = arith.addf %14, %13 : vector<8x128xf32>
    %16 = arith.divf %14, %15 : vector<8x128xf32>
    %17 = vector.extract_strided_slice %16 {offsets = [0, 0], sizes = [8, 64], strides = [1, 1]} : vector<8x128xf32> to vector<8x64xf32>
    %18 = vector.extract_strided_slice %16 {offsets = [0, 64], sizes = [8, 64], strides = [1, 1]} : vector<8x128xf32> to vector<8x64xf32>
    %19 = vector.extract_strided_slice %10 {offsets = [0, 128], sizes = [8, 64], strides = [1, 1]} : vector<8x192xf32> to vector<8x64xf32>
    %20 = arith.mulf %17, %9 : vector<8x64xf32>
    %21 = arith.addf %19, %20 : vector<8x64xf32>
    %22 = math.tanh %21 : vector<8x64xf32>
    %cst_10 = arith.constant 1.000000e+00 : f32
    %23 = vector.broadcast %cst_10 : f32 to vector<8x64xf32>
    %24 = arith.subf %23, %18 : vector<8x64xf32>
    %25 = arith.mulf %24, %22 : vector<8x64xf32>
    %26 = vector.extract_strided_slice %5 {offsets = [8, 0], sizes = [8, 192], strides = [1, 1]} : vector<64x192xf32> to vector<8x192xf32>
    %27 = arith.truncf %25 : vector<8x64xf32> to vector<8x64xbf16>
    %cst_11 = arith.constant dense<0.000000e+00> : vector<8x192xf32>
    %28 = tpu.matmul %27, %6, %cst_11 {dimension_numbers = #tpu.dot_dimension_numbers<[1], [0], [0], [1], [0, 0, 1, 1], [], []>} : vector<8x64xbf16>, vector<64x192xbf16>, vector<8x192xf32> -> vector<8x192xf32>
    %29 = vector.extract_strided_slice %26 {offsets = [0, 0], sizes = [8, 128], strides = [1, 1]} : vector<8x192xf32> to vector<8x128xf32>
    %30 = vector.extract_strided_slice %28 {offsets = [0, 0], sizes = [8, 128], strides = [1, 1]} : vector<8x192xf32> to vector<8x128xf32>
    %31 = arith.addf %29, %30 : vector<8x128xf32>
    %32 = arith.negf %31 : vector<8x128xf32>
    %33 = math.exp %32 : vector<8x128xf32>
    %cst_12 = arith.constant 1.000000e+00 : f32
    %34 = vector.broadcast %cst_12 : f32 to vector<8x128xf32>
    %35 = arith.addf %34, %33 : vector<8x128xf32>
    %36 = arith.divf %34, %35 : vector<8x128xf32>
    %37 = vector.extract_strided_slice %36 {offsets = [0, 0], sizes = [8, 64], strides = [1, 1]} : vector<8x128xf32> to vector<8x64xf32>
    %38 = vector.extract_strided_slice %36 {offsets = [0, 64], sizes = [8, 64], strides = [1, 1]} : vector<8x128xf32> to vector<8x64xf32>
    %39 = vector.extract_strided_slice %26 {offsets = [0, 128], sizes = [8, 64], strides = [1, 1]} : vector<8x192xf32> to vector<8x64xf32>
    %40 = vector.extract_strided_slice %28 {offsets = [0, 128], sizes = [8, 64], strides = [1, 1]} : vector<8x192xf32> to vector<8x64xf32>
    %41 = arith.addf %40, %9 : vector<8x64xf32>
    %42 = arith.mulf %37, %41 : vector<8x64xf32>
    %43 = arith.addf %39, %42 : vector<8x64xf32>
    %44 = math.tanh %43 : vector<8x64xf32>
    %cst_13 = arith.constant 1.000000e+00 : f32
    %45 = vector.broadcast %cst_13 : f32 to vector<8x64xf32>
    %46 = arith.subf %45, %38 : vector<8x64xf32>
    %47 = arith.mulf %46, %44 : vector<8x64xf32>
    %48 = arith.mulf %38, %25 : vector<8x64xf32>
    %49 = arith.addf %47, %48 : vector<8x64xf32>
    %50 = vector.extract_strided_slice %5 {offsets = [16, 0], sizes = [8, 192], strides = [1, 1]} : vector<64x192xf32> to vector<8x192xf32>
    %51 = arith.truncf %49 : vector<8x64xf32> to vector<8x64xbf16>
    %cst_14 = arith.constant dense<0.000000e+00> : vector<8x192xf32>
    %52 = tpu.matmul %51, %6, %cst_14 {dimension_numbers = #tpu.dot_dimension_numbers<[1], [0], [0], [1], [0, 0, 1, 1], [], []>} : vector<8x64xbf16>, vector<64x192xbf16>, vector<8x192xf32> -> vector<8x192xf32>
    %53 = vector.extract_strided_slice %50 {offsets = [0, 0], sizes = [8, 128], strides = [1, 1]} : vector<8x192xf32> to vector<8x128xf32>
    %54 = vector.extract_strided_slice %52 {offsets = [0, 0], sizes = [8, 128], strides = [1, 1]} : vector<8x192xf32> to vector<8x128xf32>
    %55 = arith.addf %53, %54 : vector<8x128xf32>
    %56 = arith.negf %55 : vector<8x128xf32>
    %57 = math.exp %56 : vector<8x128xf32>
    %cst_15 = arith.constant 1.000000e+00 : f32
    %58 = vector.broadcast %cst_15 : f32 to vector<8x128xf32>
    %59 = arith.addf %58, %57 : vector<8x128xf32>
    %60 = arith.divf %58, %59 : vector<8x128xf32>
    %61 = vector.extract_strided_slice %60 {offsets = [0, 0], sizes = [8, 64], strides = [1, 1]} : vector<8x128xf32> to vector<8x64xf32>
    %62 = vector.extract_strided_slice %60 {offsets = [0, 64], sizes = [8, 64], strides = [1, 1]} : vector<8x128xf32> to vector<8x64xf32>
    %63 = vector.extract_strided_slice %50 {offsets = [0, 128], sizes = [8, 64], strides = [1, 1]} : vector<8x192xf32> to vector<8x64xf32>
    %64 = vector.extract_strided_slice %52 {offsets = [0, 128], sizes = [8, 64], strides = [1, 1]} : vector<8x192xf32> to vector<8x64xf32>
    %65 = arith.addf %64, %9 : vector<8x64xf32>
    %66 = arith.mulf %61, %65 : vector<8x64xf32>
    %67 = arith.addf %63, %66 : vector<8x64xf32>
    %68 = math.tanh %67 : vector<8x64xf32>
    %cst_16 = arith.constant 1.000000e+00 : f32
    %69 = vector.broadcast %cst_16 : f32 to vector<8x64xf32>
    %70 = arith.subf %69, %62 : vector<8x64xf32>
    %71 = arith.mulf %70, %68 : vector<8x64xf32>
    %72 = arith.mulf %62, %49 : vector<8x64xf32>
    %73 = arith.addf %71, %72 : vector<8x64xf32>
    %74 = vector.extract_strided_slice %5 {offsets = [24, 0], sizes = [8, 192], strides = [1, 1]} : vector<64x192xf32> to vector<8x192xf32>
    %75 = arith.truncf %73 : vector<8x64xf32> to vector<8x64xbf16>
    %cst_17 = arith.constant dense<0.000000e+00> : vector<8x192xf32>
    %76 = tpu.matmul %75, %6, %cst_17 {dimension_numbers = #tpu.dot_dimension_numbers<[1], [0], [0], [1], [0, 0, 1, 1], [], []>} : vector<8x64xbf16>, vector<64x192xbf16>, vector<8x192xf32> -> vector<8x192xf32>
    %77 = vector.extract_strided_slice %74 {offsets = [0, 0], sizes = [8, 128], strides = [1, 1]} : vector<8x192xf32> to vector<8x128xf32>
    %78 = vector.extract_strided_slice %76 {offsets = [0, 0], sizes = [8, 128], strides = [1, 1]} : vector<8x192xf32> to vector<8x128xf32>
    %79 = arith.addf %77, %78 : vector<8x128xf32>
    %80 = arith.negf %79 : vector<8x128xf32>
    %81 = math.exp %80 : vector<8x128xf32>
    %cst_18 = arith.constant 1.000000e+00 : f32
    %82 = vector.broadcast %cst_18 : f32 to vector<8x128xf32>
    %83 = arith.addf %82, %81 : vector<8x128xf32>
    %84 = arith.divf %82, %83 : vector<8x128xf32>
    %85 = vector.extract_strided_slice %84 {offsets = [0, 0], sizes = [8, 64], strides = [1, 1]} : vector<8x128xf32> to vector<8x64xf32>
    %86 = vector.extract_strided_slice %84 {offsets = [0, 64], sizes = [8, 64], strides = [1, 1]} : vector<8x128xf32> to vector<8x64xf32>
    %87 = vector.extract_strided_slice %74 {offsets = [0, 128], sizes = [8, 64], strides = [1, 1]} : vector<8x192xf32> to vector<8x64xf32>
    %88 = vector.extract_strided_slice %76 {offsets = [0, 128], sizes = [8, 64], strides = [1, 1]} : vector<8x192xf32> to vector<8x64xf32>
    %89 = arith.addf %88, %9 : vector<8x64xf32>
    %90 = arith.mulf %85, %89 : vector<8x64xf32>
    %91 = arith.addf %87, %90 : vector<8x64xf32>
    %92 = math.tanh %91 : vector<8x64xf32>
    %cst_19 = arith.constant 1.000000e+00 : f32
    %93 = vector.broadcast %cst_19 : f32 to vector<8x64xf32>
    %94 = arith.subf %93, %86 : vector<8x64xf32>
    %95 = arith.mulf %94, %92 : vector<8x64xf32>
    %96 = arith.mulf %86, %73 : vector<8x64xf32>
    %97 = arith.addf %95, %96 : vector<8x64xf32>
    %98 = vector.extract_strided_slice %5 {offsets = [32, 0], sizes = [8, 192], strides = [1, 1]} : vector<64x192xf32> to vector<8x192xf32>
    %99 = arith.truncf %97 : vector<8x64xf32> to vector<8x64xbf16>
    %cst_20 = arith.constant dense<0.000000e+00> : vector<8x192xf32>
    %100 = tpu.matmul %99, %6, %cst_20 {dimension_numbers = #tpu.dot_dimension_numbers<[1], [0], [0], [1], [0, 0, 1, 1], [], []>} : vector<8x64xbf16>, vector<64x192xbf16>, vector<8x192xf32> -> vector<8x192xf32>
    %101 = vector.extract_strided_slice %98 {offsets = [0, 0], sizes = [8, 128], strides = [1, 1]} : vector<8x192xf32> to vector<8x128xf32>
    %102 = vector.extract_strided_slice %100 {offsets = [0, 0], sizes = [8, 128], strides = [1, 1]} : vector<8x192xf32> to vector<8x128xf32>
    %103 = arith.addf %101, %102 : vector<8x128xf32>
    %104 = arith.negf %103 : vector<8x128xf32>
    %105 = math.exp %104 : vector<8x128xf32>
    %cst_21 = arith.constant 1.000000e+00 : f32
    %106 = vector.broadcast %cst_21 : f32 to vector<8x128xf32>
    %107 = arith.addf %106, %105 : vector<8x128xf32>
    %108 = arith.divf %106, %107 : vector<8x128xf32>
    %109 = vector.extract_strided_slice %108 {offsets = [0, 0], sizes = [8, 64], strides = [1, 1]} : vector<8x128xf32> to vector<8x64xf32>
    %110 = vector.extract_strided_slice %108 {offsets = [0, 64], sizes = [8, 64], strides = [1, 1]} : vector<8x128xf32> to vector<8x64xf32>
    %111 = vector.extract_strided_slice %98 {offsets = [0, 128], sizes = [8, 64], strides = [1, 1]} : vector<8x192xf32> to vector<8x64xf32>
    %112 = vector.extract_strided_slice %100 {offsets = [0, 128], sizes = [8, 64], strides = [1, 1]} : vector<8x192xf32> to vector<8x64xf32>
    %113 = arith.addf %112, %9 : vector<8x64xf32>
    %114 = arith.mulf %109, %113 : vector<8x64xf32>
    %115 = arith.addf %111, %114 : vector<8x64xf32>
    %116 = math.tanh %115 : vector<8x64xf32>
    %cst_22 = arith.constant 1.000000e+00 : f32
    %117 = vector.broadcast %cst_22 : f32 to vector<8x64xf32>
    %118 = arith.subf %117, %110 : vector<8x64xf32>
    %119 = arith.mulf %118, %116 : vector<8x64xf32>
    %120 = arith.mulf %110, %97 : vector<8x64xf32>
    %121 = arith.addf %119, %120 : vector<8x64xf32>
    %122 = vector.extract_strided_slice %5 {offsets = [40, 0], sizes = [8, 192], strides = [1, 1]} : vector<64x192xf32> to vector<8x192xf32>
    %123 = arith.truncf %121 : vector<8x64xf32> to vector<8x64xbf16>
    %cst_23 = arith.constant dense<0.000000e+00> : vector<8x192xf32>
    %124 = tpu.matmul %123, %6, %cst_23 {dimension_numbers = #tpu.dot_dimension_numbers<[1], [0], [0], [1], [0, 0, 1, 1], [], []>} : vector<8x64xbf16>, vector<64x192xbf16>, vector<8x192xf32> -> vector<8x192xf32>
    %125 = vector.extract_strided_slice %122 {offsets = [0, 0], sizes = [8, 128], strides = [1, 1]} : vector<8x192xf32> to vector<8x128xf32>
    %126 = vector.extract_strided_slice %124 {offsets = [0, 0], sizes = [8, 128], strides = [1, 1]} : vector<8x192xf32> to vector<8x128xf32>
    %127 = arith.addf %125, %126 : vector<8x128xf32>
    %128 = arith.negf %127 : vector<8x128xf32>
    %129 = math.exp %128 : vector<8x128xf32>
    %cst_24 = arith.constant 1.000000e+00 : f32
    %130 = vector.broadcast %cst_24 : f32 to vector<8x128xf32>
    %131 = arith.addf %130, %129 : vector<8x128xf32>
    %132 = arith.divf %130, %131 : vector<8x128xf32>
    %133 = vector.extract_strided_slice %132 {offsets = [0, 0], sizes = [8, 64], strides = [1, 1]} : vector<8x128xf32> to vector<8x64xf32>
    %134 = vector.extract_strided_slice %132 {offsets = [0, 64], sizes = [8, 64], strides = [1, 1]} : vector<8x128xf32> to vector<8x64xf32>
    %135 = vector.extract_strided_slice %122 {offsets = [0, 128], sizes = [8, 64], strides = [1, 1]} : vector<8x192xf32> to vector<8x64xf32>
    %136 = vector.extract_strided_slice %124 {offsets = [0, 128], sizes = [8, 64], strides = [1, 1]} : vector<8x192xf32> to vector<8x64xf32>
    %137 = arith.addf %136, %9 : vector<8x64xf32>
    %138 = arith.mulf %133, %137 : vector<8x64xf32>
    %139 = arith.addf %135, %138 : vector<8x64xf32>
    %140 = math.tanh %139 : vector<8x64xf32>
    %cst_25 = arith.constant 1.000000e+00 : f32
    %141 = vector.broadcast %cst_25 : f32 to vector<8x64xf32>
    %142 = arith.subf %141, %134 : vector<8x64xf32>
    %143 = arith.mulf %142, %140 : vector<8x64xf32>
    %144 = arith.mulf %134, %121 : vector<8x64xf32>
    %145 = arith.addf %143, %144 : vector<8x64xf32>
    %146 = vector.extract_strided_slice %5 {offsets = [48, 0], sizes = [8, 192], strides = [1, 1]} : vector<64x192xf32> to vector<8x192xf32>
    %147 = arith.truncf %145 : vector<8x64xf32> to vector<8x64xbf16>
    %cst_26 = arith.constant dense<0.000000e+00> : vector<8x192xf32>
    %148 = tpu.matmul %147, %6, %cst_26 {dimension_numbers = #tpu.dot_dimension_numbers<[1], [0], [0], [1], [0, 0, 1, 1], [], []>} : vector<8x64xbf16>, vector<64x192xbf16>, vector<8x192xf32> -> vector<8x192xf32>
    %149 = vector.extract_strided_slice %146 {offsets = [0, 0], sizes = [8, 128], strides = [1, 1]} : vector<8x192xf32> to vector<8x128xf32>
    %150 = vector.extract_strided_slice %148 {offsets = [0, 0], sizes = [8, 128], strides = [1, 1]} : vector<8x192xf32> to vector<8x128xf32>
    %151 = arith.addf %149, %150 : vector<8x128xf32>
    %152 = arith.negf %151 : vector<8x128xf32>
    %153 = math.exp %152 : vector<8x128xf32>
    %cst_27 = arith.constant 1.000000e+00 : f32
    %154 = vector.broadcast %cst_27 : f32 to vector<8x128xf32>
    %155 = arith.addf %154, %153 : vector<8x128xf32>
    %156 = arith.divf %154, %155 : vector<8x128xf32>
    %157 = vector.extract_strided_slice %156 {offsets = [0, 0], sizes = [8, 64], strides = [1, 1]} : vector<8x128xf32> to vector<8x64xf32>
    %158 = vector.extract_strided_slice %156 {offsets = [0, 64], sizes = [8, 64], strides = [1, 1]} : vector<8x128xf32> to vector<8x64xf32>
    %159 = vector.extract_strided_slice %146 {offsets = [0, 128], sizes = [8, 64], strides = [1, 1]} : vector<8x192xf32> to vector<8x64xf32>
    %160 = vector.extract_strided_slice %148 {offsets = [0, 128], sizes = [8, 64], strides = [1, 1]} : vector<8x192xf32> to vector<8x64xf32>
    %161 = arith.addf %160, %9 : vector<8x64xf32>
    %162 = arith.mulf %157, %161 : vector<8x64xf32>
    %163 = arith.addf %159, %162 : vector<8x64xf32>
    %164 = math.tanh %163 : vector<8x64xf32>
    %cst_28 = arith.constant 1.000000e+00 : f32
    %165 = vector.broadcast %cst_28 : f32 to vector<8x64xf32>
    %166 = arith.subf %165, %158 : vector<8x64xf32>
    %167 = arith.mulf %166, %164 : vector<8x64xf32>
    %168 = arith.mulf %158, %145 : vector<8x64xf32>
    %169 = arith.addf %167, %168 : vector<8x64xf32>
    %170 = vector.extract_strided_slice %5 {offsets = [56, 0], sizes = [8, 192], strides = [1, 1]} : vector<64x192xf32> to vector<8x192xf32>
    %171 = arith.truncf %169 : vector<8x64xf32> to vector<8x64xbf16>
    %cst_29 = arith.constant dense<0.000000e+00> : vector<8x192xf32>
    %172 = tpu.matmul %171, %6, %cst_29 {dimension_numbers = #tpu.dot_dimension_numbers<[1], [0], [0], [1], [0, 0, 1, 1], [], []>} : vector<8x64xbf16>, vector<64x192xbf16>, vector<8x192xf32> -> vector<8x192xf32>
    %173 = vector.extract_strided_slice %170 {offsets = [0, 0], sizes = [8, 128], strides = [1, 1]} : vector<8x192xf32> to vector<8x128xf32>
    %174 = vector.extract_strided_slice %172 {offsets = [0, 0], sizes = [8, 128], strides = [1, 1]} : vector<8x192xf32> to vector<8x128xf32>
    %175 = arith.addf %173, %174 : vector<8x128xf32>
    %176 = arith.negf %175 : vector<8x128xf32>
    %177 = math.exp %176 : vector<8x128xf32>
    %cst_30 = arith.constant 1.000000e+00 : f32
    %178 = vector.broadcast %cst_30 : f32 to vector<8x128xf32>
    %179 = arith.addf %178, %177 : vector<8x128xf32>
    %180 = arith.divf %178, %179 : vector<8x128xf32>
    %181 = vector.extract_strided_slice %180 {offsets = [0, 0], sizes = [8, 64], strides = [1, 1]} : vector<8x128xf32> to vector<8x64xf32>
    %182 = vector.extract_strided_slice %180 {offsets = [0, 64], sizes = [8, 64], strides = [1, 1]} : vector<8x128xf32> to vector<8x64xf32>
    %183 = vector.extract_strided_slice %170 {offsets = [0, 128], sizes = [8, 64], strides = [1, 1]} : vector<8x192xf32> to vector<8x64xf32>
    %184 = vector.extract_strided_slice %172 {offsets = [0, 128], sizes = [8, 64], strides = [1, 1]} : vector<8x192xf32> to vector<8x64xf32>
    %185 = arith.addf %184, %9 : vector<8x64xf32>
    %186 = arith.mulf %181, %185 : vector<8x64xf32>
    %187 = arith.addf %183, %186 : vector<8x64xf32>
    %188 = math.tanh %187 : vector<8x64xf32>
    %cst_31 = arith.constant 1.000000e+00 : f32
    %189 = vector.broadcast %cst_31 : f32 to vector<8x64xf32>
    %190 = arith.subf %189, %182 : vector<8x64xf32>
    %191 = arith.mulf %190, %188 : vector<8x64xf32>
    %192 = arith.mulf %182, %169 : vector<8x64xf32>
    %193 = arith.addf %191, %192 : vector<8x64xf32>
    %194 = arith.truncf %193 : vector<8x64xf32> to vector<8x64xbf16>
    %c0_32 = arith.constant 0 : index
    %c0_33 = arith.constant 0 : index
    %195 = vector.load %arg5[%c0_32, %c0_33] : memref<64x16xbf16, #tpu.memory_space<vmem>>, vector<64x16xbf16>
    %cst_34 = arith.constant dense<0.000000e+00> : vector<8x16xf32>
    %196 = tpu.matmul %194, %195, %cst_34 {dimension_numbers = #tpu.dot_dimension_numbers<[1], [0], [0], [1], [0, 0, 1, 1], [], []>} : vector<8x64xbf16>, vector<64x16xbf16>, vector<8x16xf32> -> vector<8x16xf32>
    %c0_35 = arith.constant 0 : index
    %c0_36 = arith.constant 0 : index
    %197 = vector.load %arg6[%c0_35, %c0_36] : memref<1x16xf32, #tpu.memory_space<vmem>>, vector<1x16xf32>
    %198 = vector.broadcast %197 : vector<1x16xf32> to vector<8x16xf32>
    %199 = arith.addf %196, %198 : vector<8x16xf32>
    %200 = math.tanh %199 : vector<8x16xf32>
    %201 = arith.truncf %200 : vector<8x16xf32> to vector<8x16xbf16>
    %c0_37 = arith.constant 0 : index
    %c0_38 = arith.constant 0 : index
    %202 = vector.load %arg7[%c0_37, %c0_38] : memref<16x45xbf16, #tpu.memory_space<vmem>>, vector<16x45xbf16>
    %cst_39 = arith.constant dense<0.000000e+00> : vector<8x45xf32>
    %203 = tpu.matmul %201, %202, %cst_39 {dimension_numbers = #tpu.dot_dimension_numbers<[1], [0], [0], [1], [0, 0, 1, 1], [], []>} : vector<8x16xbf16>, vector<16x45xbf16>, vector<8x45xf32> -> vector<8x45xf32>
    %c0_40 = arith.constant 0 : index
    %c0_41 = arith.constant 0 : index
    %204 = vector.load %arg8[%c0_40, %c0_41] : memref<1x45xf32, #tpu.memory_space<vmem>>, vector<1x45xf32>
    %205 = vector.broadcast %204 : vector<1x45xf32> to vector<8x45xf32>
    %206 = arith.addf %203, %205 : vector<8x45xf32>
    %207 = vector.extract_strided_slice %206 {offsets = [0, 0], sizes = [8, 5], strides = [1, 1]} : vector<8x45xf32> to vector<8x5xf32>
    %cst_42 = arith.constant dense<0xFF800000> : vector<8xf32>
    %208 = vector.multi_reduction <maximumf>, %207, %cst_42 [1] : vector<8x5xf32> to vector<8xf32>
    %209 = vector.shape_cast %208 : vector<8xf32> to vector<8x1xf32>
    %210 = vector.broadcast %209 : vector<8x1xf32> to vector<8x5xf32>
    %211 = arith.subf %207, %210 : vector<8x5xf32>
    %212 = math.exp %211 : vector<8x5xf32>
    %cst_43 = arith.constant dense<0.000000e+00> : vector<8xf32>
    %213 = vector.multi_reduction <add>, %212, %cst_43 [1] : vector<8x5xf32> to vector<8xf32>
    %214 = vector.shape_cast %213 : vector<8xf32> to vector<8x1xf32>
    %215 = vector.broadcast %214 : vector<8x1xf32> to vector<8x5xf32>
    %216 = arith.divf %212, %215 : vector<8x5xf32>
    %217 = vector.extract_strided_slice %206 {offsets = [0, 5], sizes = [8, 20], strides = [1, 1]} : vector<8x45xf32> to vector<8x20xf32>
    %218 = vector.extract_strided_slice %206 {offsets = [0, 25], sizes = [8, 20], strides = [1, 1]} : vector<8x45xf32> to vector<8x20xf32>
    %219 = math.exp %218 : vector<8x20xf32>
    %cst_44 = arith.constant 0.000000e+00 : f32
    %220 = vector.broadcast %cst_44 : f32 to vector<8x83xf32>
    %221 = tpu.concatenate %216, %217, %219, %220 in 1 : vector<8x5xf32>, vector<8x20xf32>, vector<8x20xf32>, vector<8x83xf32> -> vector<8x128xf32>
    %c0_45 = arith.constant 0 : index
    %c0_46 = arith.constant 0 : index
    %222 = vector.load %arg9[%c0_45, %c0_46] : memref<8x128xf32, #tpu.memory_space<vmem>>, vector<8x128xf32>
    tpu.vector_store %arg9[%c0_45, %c0_46], %221 {strides = array<i32>} : memref<8x128xf32, #tpu.memory_space<vmem>>, vector<8x128xf32>,
    return
  }
}

</mosaic_0001>

<bundles_post_ra>
// kernel: tpu_custom_call.1
= control target key start
LH: loop header
LB: loop body
LE: loop exit
PB: predicated region body
PF: predicated region fallthrough
CT: control target
= control target key end

     0   :  { %14 = vsyncpa [#allocation3], 0  ;;  %s1428_s0 = inlined_call_operand.vmem [shape: bf16[64,16], index: 0, kind: input, shape index: {}]   ;;  %s1429_s1 = inlined_call_operand.vmem [shape: bf16[16,192], index: 1, kind: input, shape index: {}]   ;;  %s1430_s2 = inlined_call_operand.vmem [shape: bf16[64,192], index: 2, kind: input, shape index: {}]   ;;  %s1431_s3 = inlined_call_operand.vmem [shape: f32[1,192], index: 3, kind: input, shape index: {}]   ;;  %s1432_s4 = inlined_call_operand.hbm [shape: f32[1,64], index: 4, kind: input, shape index: {}]   ;;  %s1433_s5 = inlined_call_operand.vmem [shape: bf16[64,16], index: 5, kind: input, shape index: {}]   ;;  %s1434_s6 = inlined_call_operand.vmem [shape: f32[1,16], index: 6, kind: input, shape index: {}]   ;;  %s1435_s7 = inlined_call_operand.vmem [shape: bf16[16,45], index: 7, kind: input, shape index: {}]   ;;  %s1436_s8 = inlined_call_operand.vmem [shape: f32[1,45], index: 8, kind: input, shape index: {}]   ;;  %s1437_s9 = inlined_call_operand.hbm [shape: f32[8,128], index: 9, kind: output, shape index: {}]  }
   0x1   :  { %15 = vsyncpa [#allocation4], 0  ;;  %s1107_s30 = smov [#allocation2]   ;;  %s1059_s13 = scalar_lea.hbm %s1432_s4, 16 }
   0x2   :  { %s30_s10 = sshll.u32 %s1107_s30, 4  ;;  %p1060_p0 = scmp.ne.s32.totalorder %s1432_s4, %s1059_s13  ;;  %s31_s10 = int_to_ptr.vmem [resolvable:$true] %s30_s10 }
   0x3   :  { %p1063_p1 = scmp.lt.u32.totalorder %s1059_s13, %s1432_s4 }
   0x5   :  { %p1065_p2 = pnand %p1063_p1, %p1060_p0 }
   0x7   :  { %1068 = shalt.err (!%p1065_p2)
}
   0x8   :  { %s1069_s18 = scalar_lea.vmem %s31_s10, 16  ;;  %s1073_s19 = scalar_lea.vmem %s31_s10, 32 }
   0x9   :  { %p1070_p3 = scmp.ne.s32.totalorder %s31_s10, %s1069_s18  ;;  %p1074_p4 = scmp.lt.s32.totalorder %s31_s10, %s31_s10 }
   0xa   :  { %p1075_p5 = scmp.lt.s32.totalorder %s1073_s19, %s1069_s18 }
   0xc   :  { %p1076_p6 = por %p1075_p5, %p1074_p4 }
   0xe   :  { %p1077_p7 = pnand %p1076_p6, %p1070_p3 }
  0x10   :  { %1080 = shalt.err (!%p1077_p7)
}
  0x11   :  { %33 = dma.hbm_to_vmem [thread:$0]  %s1432_s4, 16, %s31_s10, [#allocation3]  }
  0x12   :  { %1103 = dma.done.wait [#allocation3], 16  }
  0x13   :  { %1104 = vsyncadd [#allocation3], 4294967280  ;;  %v1108_v0 = vmov 0   ;;  %v979_v1 = vld [vmem:[%s1429_s1 + $0x4] ss:$8 sps:$4 sm:$0xff]   ;;  %vm98_vm0 = vcmask 130048   ;;  %v58_v4 = vlaneseq }
  0x14   :  { %143 = vmatprep.mubr.bf16.mxu0 %v1108_v0  ;;  %294 = vmatprep.mubr.bf16.mxu1 %v1108_v0  ;;  %v981_v2 = vld [vmem:[%s1429_s1] ss:$8 sps:$4 sm:$0xff]   ;;  %v1205_v24 = vld [vmem:[%s1430_s2 + $0x4] ss:$8 sps:$4 sm:$0xff]   ;;  %v1215_v26 = vld [vmem:[%s1430_s2 + $0x14] ss:$8 sps:$4 sm:$0xff]  }
  0x15   :  { %111 = vmatprep.subr.bf16.mxu0 %v979_v1  ;;  %v982_v3 = vld [vmem:[%s1428_s0] sm:$0xff]   ;;  %v59_v5 = vshrl.u32 %v58_v4, 7  ;;  %262 = vmatprep.subr.bf16.mxu1 %v1205_v24  ;;  %v1223_v27 = vld [vmem:[%s1430_s2 + $0x10] ss:$8 sps:$4 sm:$0xff]   ;;  %v1244_v31 = vld [vmem:[%s1430_s2 + $0x34] ss:$8 sps:$4 sm:$0xff]  }
  0x16   :  { %112 = vmatpush1.bf16.msra.mxu0 %v981_v2  ;;  %v56_v7 = vld [vmem:[%s1431_s3] sm:$0x3]  ;;  %v1230_v28 = vld [vmem:[%s1430_s2 + $0x24] ss:$8 sps:$4 sm:$0xff]   ;;  %s1109_s20 = smov 64   ;;  %vm258_vm1 = vcmask 523264  }
  0x17   :  { %v60_v6 = vsub.s32 0, %v59_v5  ;;  %v64_v17 = vsub.s32 1, %v59_v5  ;;  %v1198_v19 = vld [vmem:[#allocation2] ss:$0 sm:$0xff]  ;;  %396 = vmatprep.subr.bf16.mxu0 %v1205_v24  ;;  %v1252_v32 = vld [vmem:[%s1430_s2 + $0x30] ss:$8 sps:$4 sm:$0xff]  }
  0x18   :  { %v1210_v25 = vld [vmem:[%s1430_s2] ss:$8 sps:$4 sm:$0xff]   ;;  %vm1111_vm2 = vmmov 0   ;;  %vm870_vm3 = vcmask 39936   ;;  %vm885_vm4 = vcmask 203776   ;;  %vm887_vm5 = vcmask 367616  }
  0x19   :  { %911 = vmatmul.mubr.msk.bf16.vlgmr.msra.gmra.mrb[0].mxu0 %vm98_vm0, %v982_v3  ;;  %v1191_v8 = vrot.slane %v56_v7, %v60_v6  ;;  %v1196_v18 = vrot.slane %v56_v7, %v64_v17  ;;  %263 = vmatpush1.bf16.msra.mxu1 %v1210_v25  ;;  %v1237_v29 = vld [vmem:[%s1430_s2 + $0x20] ss:$8 sps:$4 sm:$0xff]   ;;  %v996_v17 = vld [vmem:[%s1428_s0 + $0x10] sm:$0xff]  }
  0x1a   :  { %153 = vmatprep.mubr.bf16.mxu0 %v1108_v0  ;;  %397 = vmatpush1.bf16.msra.mxu0 %v1210_v25  ;;  %v995_v52 = vld [vmem:[%s1428_s0 + $0x8] sm:$0xff]  }
  0x1b   :  { %264 = vmatprep.subr.bf16.mxu1 %v1215_v26  ;;  %398 = vmatprep.subr.bf16.mxu0 %v1215_v26 }
  0x1d   :  { %265 = vmatpush1.bf16.msra.mxu1 %v1223_v27 }
  0x1e   :  { %399 = vmatpush1.bf16.msra.mxu0 %v1223_v27  ;;  %266 = vmatprep.subr.bf16.mxu1 %v1230_v28 }
  0x1f   :  { %400 = vmatprep.subr.bf16.mxu0 %v1230_v28 }
  0x21   :  { %267 = vmatpush1.bf16.msra.mxu1 %v1237_v29  ;;  %912 = vmatmul.mubr.msk.bf16.gmra.mrb[4].mxu0 %vm98_vm0, %v995_v52 }
  0x22   :  { %401 = vmatpush1.bf16.msra.mxu0 %v1237_v29  ;;  %268 = vmatprep.subr.bf16.mxu1 %v1244_v31 }
  0x23   :  { %402 = vmatprep.subr.bf16.mxu0 %v1244_v31  ;;  %163 = vmatprep.mubr.bf16.mxu0 %v1108_v0 }
  0x25   :  { %269 = vmatpush1.bf16.msra.mxu1 %v1252_v32 }
  0x26   :  { %403 = vmatpush1.bf16.msra.mxu0 %v1252_v32  ;;  %329 = vmatprep.subr.bf16.mxu1 %v1205_v24 }
  0x27   :  { %530 = vmatprep.subr.bf16.mxu0 %v1205_v24 }
  0x29   :  { %913 = vmatmul.mubr.msk.bf16.gmra.mrb[8].mxu0 %vm98_vm0, %v996_v17 }
  0x2a   :  { %173 = vmatprep.mubr.bf16.mxu0 %v1108_v0 }
  0xec   :  { %v145_v9 = vpop.f32.mrb[0].mxu0 }
  0xed   :  { %v146_v10 = vadd.f32 %v145_v9, %v1191_v8  ;;  %v147_v11 = vpop.f32.mrb[1].mxu0 }
  0xee   :  { %v149_v12 = vpop.f32.mrb[2].mxu0  ;;  %v148_v21 = vadd.f32 %v147_v11, %v1196_v18 }
  0xef   :  { %v916_v13 = vmul.f32 -1.442695, %v146_v10  ;;  %v1194_v14 = vpop.f32.mrb[3].mxu0  ;;  %v150_v38 = vadd.f32 %v149_v12, %v1191_v8 }
  0xf0   :  { %v152_v49 = vadd.f32 %v1194_v14, %v1196_v18 }
  0xf1   :  { %1003 = vpow2.f32 %v916_v13 }
  0xf4   :  { %v155_v60 = vpop.f32.mrb[4].mxu0 }
  0xf5   :  { %v157_v61 = vpop.f32.mrb[5].mxu0  ;;  %v156_v2 = vadd.f32 %v155_v60, %v1191_v8 }
  0xf6   :  { %v1283_v62 = vpop.f32.mrb[6].mxu0  ;;  %v158_v14 = vadd.f32 %v157_v61, %v1196_v18 }
  0xf7   :  { %v1285_v63 = vpop.f32.mrb[7].mxu0 }
  0xfb   :  { %v1004_v15 = vpop.eup %1003 }
  0xfc   :  { %v202_v16 = vadd.f32 1.0, %v1004_v15 }
  0xfe   :  { %1005 = vrcp.f32 %v202_v16 }
 0x108   :  { %v1006_v20 = vpop.eup %1005 }
 0x109   :  { %v205_v22 = vmul.f32 %v1006_v20, %v1198_v19  ;;  %v208_v33 = vsub.f32 1.0, %v1006_v20 }
 0x10b   :  { %v206_v23 = vadd.f32 %v205_v22, %v148_v21  ;;  %v997_v21 = vld [vmem:[%s1428_s0 + $0x18] sm:$0xff]  }
 0x10c   :  { %914 = vmatmul.mubr.msk.bf16.gmra.mrb[12].mxu0 %vm98_vm0, %v997_v21 }
 0x10d   :  { %1007 = vtanh.f32 %v206_v23  ;;  %428 = vmatprep.mubr.bf16.mxu0 %v1108_v0 }
 0x117   :  { %v1008_v30 = vpop.eup %1007 }
 0x118   :  { %210 = vrot.lane.b32.xlu0 %v1008_v30, %s1109_s20 }
 0x18a   :  { %v211_v34 = vpop.permute.xlu0 %210 }
 0x18b   :  { %v213_v35 = vmul.f32 %v211_v34, %v208_v33 }
 0x18d   :  { %v214_v36 = vpack.c.bf16 %v213_v35, %v213_v35 }
 0x18f   :  { %216 = vrot.lane.b32.xlu0 %v214_v36, %s1109_s20  ;;  %v165_v36 = vpop.f32.mrb[8].mxu0 }
 0x201   :  { %v217_v37 = vpop.permute.xlu0 %216 }
 0x202   :  { %925 = vmatmul.mubr.msk.bf16.vlgmr.msra.gmra.mrb[0].mxu1 %vm258_vm1, %v217_v37  ;;  %v1312_v37 = vpop.f32.mrb[9].mxu0 }
 0x203   :  { %330 = vmatpush1.bf16.msra.mxu1 %v1210_v25  ;;  %361 = vmatprep.mubr.bf16.mxu1 %v1108_v0 }
 0x204   :  { %331 = vmatprep.subr.bf16.mxu1 %v1215_v26 }
 0x207   :  { %332 = vmatpush1.bf16.msra.mxu1 %v1223_v27 }
 0x208   :  { %333 = vmatprep.subr.bf16.mxu1 %v1230_v28 }
 0x20b   :  { %334 = vmatpush1.bf16.msra.mxu1 %v1237_v29 }
 0x20c   :  { %335 = vmatprep.subr.bf16.mxu1 %v1244_v31 }
 0x20f   :  { %336 = vmatpush1.bf16.msra.mxu1 %v1252_v32 }
 0x210   :  { %463 = vmatprep.subr.bf16.mxu1 %v1205_v24 }
 0x2d5   :  { %v296_v39 = vpop.f32.mrb[0].mxu1 }
 0x2d6   :  { %v303_v40 = vadd.f32 %v296_v39, %v150_v38  ;;  %v298_v41 = vpop.f32.mrb[1].mxu1  ;;  %v1314_v38 = vpop.f32.mrb[10].mxu0 }
 0x2d7   :  { %v300_v42 = vpop.f32.mrb[2].mxu1  ;;  %v310_v47 = vadd.f32 %v1198_v19, %v298_v41  ;;  %v1316_v39 = vpop.f32.mrb[11].mxu0 }
 0x2d8   :  { %v926_v43 = vmul.f32 -1.442695, %v303_v40  ;;  %v301_v44 = vpop.f32.mrb[3].mxu1  ;;  %v1318_v40 = vpop.f32.mrb[12].mxu0 }
 0x2d9   :  { %v1320_v41 = vpop.f32.mrb[13].mxu0 }
 0x2da   :  { %1009 = vpow2.f32 %v926_v43  ;;  %v1322_v42 = vpop.f32.mrb[14].mxu0 }
 0x2db   :  { %v1324_v43 = vpop.f32.mrb[15].mxu0 }
 0x2e4   :  { %v1010_v45 = vpop.eup %1009 }
 0x2e5   :  { %v307_v46 = vadd.f32 1.0, %v1010_v45  ;;  %v160_v45 = vadd.f32 %v1283_v62, %v1191_v8 }
 0x2e7   :  { %1011 = vrcp.f32 %v307_v46 }
 0x2f1   :  { %v1012_v48 = vpop.eup %1011 }
 0x2f2   :  { %v311_v50 = vmul.f32 %v1012_v48, %v310_v47  ;;  %v314_v54 = vsub.f32 1.0, %v1012_v48  ;;  %v320_v56 = vmul.f32 %v1012_v48, %v213_v35 }
 0x2f4   :  { %v312_v51 = vadd.f32 %v311_v50, %v152_v49 }
 0x2f6   :  { %1013 = vtanh.f32 %v312_v51 }
 0x300   :  { %v1014_v53 = vpop.eup %1013 }
 0x301   :  { %316 = vrot.lane.b32.xlu1 %v1014_v53, %s1109_s20 }
 0x373   :  { %v317_v55 = vpop.permute.xlu1 %316 }
 0x374   :  { %v319_v57 = vmul.f32 %v317_v55, %v314_v54 }
 0x376   :  { %v321_v58 = vadd.f32 %v320_v56, %v319_v57  ;;  %v162_v56 = vadd.f32 %v1285_v63, %v1196_v18  ;;  %v166_v63 = vadd.f32 %v165_v36, %v1191_v8  ;;  %v170_v36 = vadd.f32 %v1314_v38, %v1191_v8 }
 0x378   :  { %v322_v59 = vpack.c.bf16 %v321_v58, %v321_v58 }
 0x37a   :  { %324 = vrot.lane.b32.xlu1 %v322_v59, %s1109_s20 }
 0x3ec   :  { %v325_v1 = vpop.permute.xlu1 %324 }
 0x3ed   :  { %927 = vmatmul.mubr.msk.bf16.vlgmr.msra.gmra.mrb[4].mxu1 %vm258_vm1, %v325_v1 }
 0x3ee   :  { %464 = vmatpush1.bf16.msra.mxu1 %v1210_v25  ;;  %495 = vmatprep.mubr.bf16.mxu1 %v1108_v0 }
 0x3ef   :  { %465 = vmatprep.subr.bf16.mxu1 %v1215_v26 }
 0x3f2   :  { %466 = vmatpush1.bf16.msra.mxu1 %v1223_v27 }
 0x3f3   :  { %467 = vmatprep.subr.bf16.mxu1 %v1230_v28 }
 0x3f6   :  { %468 = vmatpush1.bf16.msra.mxu1 %v1237_v29 }
 0x3f7   :  { %469 = vmatprep.subr.bf16.mxu1 %v1244_v31 }
 0x3fa   :  { %470 = vmatpush1.bf16.msra.mxu1 %v1252_v32 }
 0x3fb   :  { %597 = vmatprep.subr.bf16.mxu1 %v1205_v24 }
 0x4c0   :  { %v363_v3 = vpop.f32.mrb[4].mxu1 }
 0x4c1   :  { %v370_v4 = vadd.f32 %v363_v3, %v156_v2  ;;  %v365_v5 = vpop.f32.mrb[5].mxu1 }
 0x4c2   :  { %v367_v6 = vpop.f32.mrb[6].mxu1  ;;  %v377_v12 = vadd.f32 %v1198_v19, %v365_v5 }
 0x4c3   :  { %v928_v7 = vmul.f32 -1.442695, %v370_v4  ;;  %v368_v9 = vpop.f32.mrb[7].mxu1 }
 0x4c5   :  { %1015 = vpow2.f32 %v928_v7 }
 0x4cf   :  { %v1016_v10 = vpop.eup %1015 }
 0x4d0   :  { %v374_v11 = vadd.f32 1.0, %v1016_v10 }
 0x4d2   :  { %1017 = vrcp.f32 %v374_v11 }
 0x4dc   :  { %v1018_v13 = vpop.eup %1017 }
 0x4dd   :  { %v378_v15 = vmul.f32 %v1018_v13, %v377_v12  ;;  %v381_v22 = vsub.f32 1.0, %v1018_v13  ;;  %v387_v30 = vmul.f32 %v1018_v13, %v321_v58 }
 0x4df   :  { %v379_v16 = vadd.f32 %v378_v15, %v158_v14  ;;  %v168_v15 = vadd.f32 %v1312_v37, %v1196_v18 }
 0x4e1   :  { %1019 = vtanh.f32 %v379_v16 }
 0x4eb   :  { %v1020_v20 = vpop.eup %1019 }
 0x4ec   :  { %383 = vrot.lane.b32.xlu0 %v1020_v20, %s1109_s20 }
 0x55e   :  { %v384_v23 = vpop.permute.xlu0 %383 }
 0x55f   :  { %v386_v33 = vmul.f32 %v384_v23, %v381_v22 }
 0x561   :  { %v388_v34 = vadd.f32 %v387_v30, %v386_v33 }
 0x563   :  { %v389_v35 = vpack.c.bf16 %v388_v34, %v388_v34 }
 0x565   :  { %391 = vrot.lane.b32.xlu1 %v389_v35, %s1109_s20 }
 0x5d7   :  { %v392_v44 = vpop.permute.xlu1 %391 }
 0x5d8   :  { %929 = vmatmul.mubr.msk.bf16.vlgmr.msra.gmra.mrb[16].mxu0 %vm258_vm1, %v392_v44 }
 0x5d9   :  { %531 = vmatpush1.bf16.msra.mxu0 %v1210_v25  ;;  %562 = vmatprep.mubr.bf16.mxu0 %v1108_v0 }
 0x5da   :  { %532 = vmatprep.subr.bf16.mxu0 %v1215_v26 }
 0x5dd   :  { %533 = vmatpush1.bf16.msra.mxu0 %v1223_v27 }
 0x5de   :  { %534 = vmatprep.subr.bf16.mxu0 %v1230_v28 }
 0x5e1   :  { %535 = vmatpush1.bf16.msra.mxu0 %v1237_v29 }
 0x5e2   :  { %536 = vmatprep.subr.bf16.mxu0 %v1244_v31 }
 0x5e5   :  { %537 = vmatpush1.bf16.msra.mxu0 %v1252_v32 }
 0x5e6   :  { %664 = vmatprep.subr.bf16.mxu0 %v1205_v24 }
 0x6ab   :  { %v430_v46 = vpop.f32.mrb[16].mxu0 }
 0x6ac   :  { %v437_v47 = vadd.f32 %v430_v46, %v160_v45  ;;  %v432_v48 = vpop.f32.mrb[17].mxu0 }
 0x6ad   :  { %v434_v49 = vpop.f32.mrb[18].mxu0  ;;  %v444_v54 = vadd.f32 %v1198_v19, %v432_v48 }
 0x6ae   :  { %v930_v50 = vmul.f32 -1.442695, %v437_v47  ;;  %v435_v51 = vpop.f32.mrb[19].mxu0 }
 0x6b0   :  { %1021 = vpow2.f32 %v930_v50 }
 0x6ba   :  { %v1022_v52 = vpop.eup %1021 }
 0x6bb   :  { %v441_v53 = vadd.f32 1.0, %v1022_v52 }
 0x6bd   :  { %1023 = vrcp.f32 %v441_v53 }
 0x6c7   :  { %v1024_v55 = vpop.eup %1023 }
 0x6c8   :  { %v445_v24 = vmul.f32 %v1024_v55, %v444_v54  ;;  %v448_v59 = vsub.f32 1.0, %v1024_v55  ;;  %v454_v61 = vmul.f32 %v1024_v55, %v388_v34 }
 0x6ca   :  { %v446_v57 = vadd.f32 %v445_v24, %v162_v56 }
 0x6cc   :  { %1025 = vtanh.f32 %v446_v57 }
 0x6d6   :  { %v1026_v58 = vpop.eup %1025 }
 0x6d7   :  { %450 = vrot.lane.b32.xlu0 %v1026_v58, %s1109_s20 }
 0x749   :  { %v451_v60 = vpop.permute.xlu0 %450 }
 0x74a   :  { %v453_v62 = vmul.f32 %v451_v60, %v448_v59 }
 0x74c   :  { %v455_v1 = vadd.f32 %v454_v61, %v453_v62 }
 0x74e   :  { %v456_v2 = vpack.c.bf16 %v455_v1, %v455_v1 }
 0x750   :  { %458 = vrot.lane.b32.xlu1 %v456_v2, %s1109_s20  ;;  %v178_v2 = vadd.f32 %v1320_v41, %v1196_v18  ;;  %v180_v41 = vadd.f32 %v1322_v42, %v1191_v8  ;;  %v1110_v42 = vmov 0.0  }
 0x7c2   :  { %v459_v3 = vpop.permute.xlu1 %458 }
 0x7c3   :  { %931 = vmatmul.mubr.msk.bf16.vlgmr.msra.gmra.mrb[8].mxu1 %vm258_vm1, %v459_v3 }
 0x7c4   :  { %598 = vmatpush1.bf16.msra.mxu1 %v1210_v25  ;;  %629 = vmatprep.mubr.bf16.mxu1 %v1108_v0 }
 0x7c5   :  { %599 = vmatprep.subr.bf16.mxu1 %v1215_v26 }
 0x7c8   :  { %600 = vmatpush1.bf16.msra.mxu1 %v1223_v27 }
 0x7c9   :  { %601 = vmatprep.subr.bf16.mxu1 %v1230_v28 }
 0x7cc   :  { %602 = vmatpush1.bf16.msra.mxu1 %v1237_v29 }
 0x7cd   :  { %603 = vmatprep.subr.bf16.mxu1 %v1244_v31 }
 0x7d0   :  { %604 = vmatpush1.bf16.msra.mxu1 %v1252_v32 }
 0x7d1   :  { %955 = vmatprep.subr.bf16.mxu1 %v1110_v42 }
 0x896   :  { %v497_v4 = vpop.f32.mrb[8].mxu1 }
 0x897   :  { %v504_v5 = vadd.f32 %v497_v4, %v166_v63  ;;  %v499_v6 = vpop.f32.mrb[9].mxu1 }
 0x898   :  { %v501_v7 = vpop.f32.mrb[10].mxu1  ;;  %v511_v13 = vadd.f32 %v1198_v19, %v499_v6 }
 0x899   :  { %v932_v9 = vmul.f32 -1.442695, %v504_v5  ;;  %v502_v10 = vpop.f32.mrb[11].mxu1 }
 0x89b   :  { %1027 = vpow2.f32 %v932_v9 }
 0x8a5   :  { %v1028_v11 = vpop.eup %1027 }
 0x8a6   :  { %v508_v12 = vadd.f32 1.0, %v1028_v11 }
 0x8a8   :  { %1029 = vrcp.f32 %v508_v12 }
 0x8b2   :  { %v1030_v14 = vpop.eup %1029 }
 0x8b3   :  { %v512_v16 = vmul.f32 %v1030_v14, %v511_v13  ;;  %v515_v21 = vsub.f32 1.0, %v1030_v14  ;;  %v521_v23 = vmul.f32 %v1030_v14, %v455_v1 }
 0x8b5   :  { %v513_v17 = vadd.f32 %v512_v16, %v168_v15 }
 0x8b7   :  { %1031 = vtanh.f32 %v513_v17 }
 0x8c1   :  { %v1032_v20 = vpop.eup %1031 }
 0x8c2   :  { %517 = vrot.lane.b32.xlu0 %v1032_v20, %s1109_s20 }
 0x934   :  { %v518_v22 = vpop.permute.xlu0 %517 }
 0x935   :  { %v520_v30 = vmul.f32 %v518_v22, %v515_v21 }
 0x937   :  { %v522_v33 = vadd.f32 %v521_v23, %v520_v30  ;;  %v182_v30 = vadd.f32 %v1324_v43, %v1196_v18  ;;  %v1000_v43 = vld [vmem:[%s1433_s5 + $0x10] sm:$0xff]  }
 0x939   :  { %v523_v34 = vpack.c.bf16 %v522_v33, %v522_v33 }
 0x93b   :  { %525 = vrot.lane.b32.xlu1 %v523_v34, %s1109_s20 }
 0x9ad   :  { %v526_v35 = vpop.permute.xlu1 %525 }
 0x9ae   :  { %933 = vmatmul.mubr.msk.bf16.vlgmr.msra.gmra.mrb[20].mxu0 %vm258_vm1, %v526_v35  ;;  %v1001_v35 = vld [vmem:[%s1433_s5 + $0x18] sm:$0xff]  }
 0x9af   :  { %665 = vmatpush1.bf16.msra.mxu0 %v1210_v25  ;;  %696 = vmatprep.mubr.bf16.mxu0 %v1108_v0 }
 0x9b0   :  { %666 = vmatprep.subr.bf16.mxu0 %v1215_v26 }
 0x9b3   :  { %667 = vmatpush1.bf16.msra.mxu0 %v1223_v27 }
 0x9b4   :  { %668 = vmatprep.subr.bf16.mxu0 %v1230_v28 }
 0x9b7   :  { %669 = vmatpush1.bf16.msra.mxu0 %v1237_v29 }
 0x9b8   :  { %670 = vmatprep.subr.bf16.mxu0 %v1244_v31  ;;  %v172_v31 = vadd.f32 %v1316_v39, %v1196_v18  ;;  %v176_v39 = vadd.f32 %v1318_v40, %v1191_v8  ;;  %v998_v8 = vld [vmem:[%s1433_s5] sm:$0xff]  }
 0x9bb   :  { %671 = vmatpush1.bf16.msra.mxu0 %v1252_v32 }
 0x9bc   :  { %967 = vmatprep.subr.bf16.mxu0 %v1110_v42 }
 0xa81   :  { %v564_v37 = vpop.f32.mrb[20].mxu0 }
 0xa82   :  { %v571_v44 = vadd.f32 %v564_v37, %v170_v36  ;;  %v566_v25 = vpop.f32.mrb[21].mxu0 }
 0xa83   :  { %v568_v45 = vpop.f32.mrb[22].mxu0  ;;  %v578_v28 = vadd.f32 %v1198_v19, %v566_v25 }
 0xa84   :  { %v934_v0 = vmul.f32 -1.442695, %v571_v44  ;;  %v569_v46 = vpop.f32.mrb[23].mxu0 }
 0xa86   :  { %1033 = vpow2.f32 %v934_v0 }
 0xa90   :  { %v1034_v26 = vpop.eup %1033 }
 0xa91   :  { %v575_v27 = vadd.f32 1.0, %v1034_v26  ;;  %v1002_v26 = vld [vmem:[%s1435_s7] sm:$0xff]  }
 0xa93   :  { %1035 = vrcp.f32 %v575_v27  ;;  %v939_v27 = vld [vmem:[%s1434_s6] ss:$0 sm:$0xff]  ;;  %s1112_s6 = smov [#allocation5]  }
 0xa94   :  { %s896_s7 = sshll.u32 %s1112_s6, 4  ;;  %s897_s7 = int_to_ptr.vmem [resolvable:$true] %s896_s7 }
 0xa95   :  { %p1086_p9 = scmp.lt.s32.totalorder %s897_s7, %s897_s7 }
 0xa9d   :  { %v1036_v29 = vpop.eup %1035 }
 0xa9e   :  { %v579_v32 = vmul.f32 %v1036_v29, %v578_v28  ;;  %v582_v48 = vsub.f32 1.0, %v1036_v29  ;;  %v588_v50 = vmul.f32 %v1036_v29, %v522_v33 }
 0xaa0   :  { %v580_v47 = vadd.f32 %v579_v32, %v172_v31 }
 0xaa2   :  { %1037 = vtanh.f32 %v580_v47 }
 0xaac   :  { %v1038_v38 = vpop.eup %1037 }
 0xaad   :  { %584 = vrot.lane.b32.xlu0 %v1038_v38, %s1109_s20 }
 0xb1f   :  { %v585_v49 = vpop.permute.xlu0 %584 }
 0xb20   :  { %v587_v51 = vmul.f32 %v585_v49, %v582_v48  ;;  %v945_v49 = vld [vmem:[%s1436_s8] ss:$0 sm:$0xff]  ;;  %s1081_s8 = scalar_lea.vmem %s897_s7, 128 }
 0xb21   :  { %p1082_p8 = scmp.ne.s32.totalorder %s897_s7, %s1081_s8  ;;  %p1087_p10 = scmp.lt.s32.totalorder %s1081_s8, %s1081_s8 }
 0xb22   :  { %v589_v52 = vadd.f32 %v588_v50, %v587_v51 }
 0xb23   :  { %p1088_p11 = por %p1087_p10, %p1086_p9 }
 0xb24   :  { %v590_v53 = vpack.c.bf16 %v589_v52, %v589_v52 }
 0xb25   :  { %p1089_p12 = pnand %p1088_p11, %p1082_p8 }
 0xb26   :  { %592 = vrot.lane.b32.xlu1 %v590_v53, %s1109_s20 }
 0xb98   :  { %v593_v54 = vpop.permute.xlu1 %592 }
 0xb99   :  { %935 = vmatmul.mubr.msk.bf16.vlgmr.msra.gmra.mrb[12].mxu1 %vm258_vm1, %v593_v54 }
 0xb9a   :  { %963 = vmatprep.mubr.msk.bf16.mxu1 %vm1111_vm2, %v1110_v42  ;;  %956 = vmatpush3.bf16.msra.mxu1 %v998_v8 }
 0xb9b   :  { %957 = vmatprep.subr.bf16.mxu1 %v1110_v42 }
 0xc6c   :  { %v631_v55 = vpop.f32.mrb[12].mxu1 }
 0xc6d   :  { %v638_v56 = vadd.f32 %v631_v55, %v176_v39  ;;  %v633_v24 = vpop.f32.mrb[13].mxu1 }
 0xc6e   :  { %v635_v57 = vpop.f32.mrb[14].mxu1  ;;  %v645_v62 = vadd.f32 %v1198_v19, %v633_v24 }
 0xc6f   :  { %v936_v58 = vmul.f32 -1.442695, %v638_v56  ;;  %v636_v59 = vpop.f32.mrb[15].mxu1 }
 0xc71   :  { %1039 = vpow2.f32 %v936_v58 }
 0xc7b   :  { %v1040_v60 = vpop.eup %1039 }
 0xc7c   :  { %v642_v61 = vadd.f32 1.0, %v1040_v60 }
 0xc7e   :  { %1041 = vrcp.f32 %v642_v61 }
 0xc88   :  { %v1042_v1 = vpop.eup %1041 }
 0xc89   :  { %v646_v3 = vmul.f32 %v1042_v1, %v645_v62  ;;  %v649_v4 = vsub.f32 1.0, %v1042_v1  ;;  %v655_v6 = vmul.f32 %v1042_v1, %v589_v52 }
 0xc8b   :  { %v647_v63 = vadd.f32 %v646_v3, %v178_v2 }
 0xc8d   :  { %1043 = vtanh.f32 %v647_v63 }
 0xc97   :  { %v1044_v40 = vpop.eup %1043 }
 0xc98   :  { %651 = vrot.lane.b32.xlu0 %v1044_v40, %s1109_s20 }
 0xd0a   :  { %v652_v5 = vpop.permute.xlu0 %651 }
 0xd0b   :  { %v654_v7 = vmul.f32 %v652_v5, %v649_v4 }
 0xd0d   :  { %v656_v9 = vadd.f32 %v655_v6, %v654_v7 }
 0xd0f   :  { %v657_v10 = vpack.c.bf16 %v656_v9, %v656_v9 }
 0xd11   :  { %659 = vrot.lane.b32.xlu1 %v657_v10, %s1109_s20 }
 0xd83   :  { %v660_v11 = vpop.permute.xlu1 %659 }
 0xd84   :  { %937 = vmatmul.mubr.msk.bf16.vlgmr.msra.gmra.mrb[24].mxu0 %vm258_vm1, %v660_v11 }
 0xd85   :  { %969 = vmatprep.mubr.msk.bf16.mxu0 %vm1111_vm2, %v1110_v42  ;;  %968 = vmatpush3.bf16.msra.mxu0 %v1002_v26 }
 0xe57   :  { %v698_v12 = vpop.f32.mrb[24].mxu0 }
 0xe58   :  { %v705_v13 = vadd.f32 %v698_v12, %v180_v41  ;;  %v700_v14 = vpop.f32.mrb[25].mxu0 }
 0xe59   :  { %v702_v15 = vpop.f32.mrb[26].mxu0  ;;  %v712_v22 = vadd.f32 %v1198_v19, %v700_v14  ;;  %v999_v19 = vld [vmem:[%s1433_s5 + $0x8] sm:$0xff]  }
 0xe5a   :  { %v938_v16 = vmul.f32 -1.442695, %v705_v13  ;;  %v703_v17 = vpop.f32.mrb[27].mxu0  ;;  %958 = vmatpush3.bf16.msra.mxu1 %v999_v19 }
 0xe5b   :  { %959 = vmatprep.subr.bf16.mxu1 %v1110_v42 }
 0xe5c   :  { %1045 = vpow2.f32 %v938_v16 }
 0xe5e   :  { %960 = vmatpush3.bf16.msra.mxu1 %v1000_v43 }
 0xe5f   :  { %961 = vmatprep.subr.bf16.mxu1 %v1110_v42 }
 0xe62   :  { %962 = vmatpush3.bf16.msra.mxu1 %v1001_v35 }
 0xe66   :  { %v1046_v20 = vpop.eup %1045 }
 0xe67   :  { %v709_v21 = vadd.f32 1.0, %v1046_v20 }
 0xe69   :  { %1047 = vrcp.f32 %v709_v21 }
 0xe73   :  { %v1048_v23 = vpop.eup %1047 }
 0xe74   :  { %v713_v33 = vmul.f32 %v1048_v23, %v712_v22  ;;  %v716_v36 = vsub.f32 1.0, %v1048_v23  ;;  %v722_v44 = vmul.f32 %v1048_v23, %v656_v9 }
 0xe76   :  { %v714_v34 = vadd.f32 %v713_v33, %v182_v30 }
 0xe78   :  { %1049 = vtanh.f32 %v714_v34 }
 0xe82   :  { %v1050_v18 = vpop.eup %1049 }
 0xe83   :  { %718 = vrot.lane.b32.xlu0 %v1050_v18, %s1109_s20 }
 0xef5   :  { %v719_v37 = vpop.permute.xlu0 %718 }
 0xef6   :  { %v721_v25 = vmul.f32 %v719_v37, %v716_v36 }
 0xef8   :  { %v723_v45 = vadd.f32 %v722_v44, %v721_v25 }
 0xefa   :  { %v724_v0 = vpack.c.bf16 %v723_v45, %v723_v45 }
 0xefc   :  { %741 = vrot.lane.b32.xlu1 %v724_v0, %s1109_s20 }
 0xf6e   :  { %v742_v46 = vpop.permute.xlu1 %741 }
 0xf6f   :  { %964 = vmatmul.mubr.msk.bf16.vlgmr.msra.gmra.mrb[16].mxu1 %vm258_vm1, %v742_v46 }
0x1042   :  { %v804_v28 = vpop.f32.mrb[16].mxu1 }
0x1043   :  { %v805_v29 = vadd.f32 %v939_v27, %v804_v28  ;;  %v965_v31 = vpop.f32.mrb[17].mxu1 }
0x1044   :  { %v807_v32 = vpop.f32.mrb[18].mxu1 }
0x1045   :  { %1051 = vtanh.f32 %v805_v29  ;;  %v966_v47 = vpop.f32.mrb[19].mxu1 }
0x104f   :  { %v1052_v38 = vpop.eup %1051 }
0x1050   :  { %v811_v48 = vpack.c.bf16 %v1052_v38, %v1052_v38 }
0x1052   :  { %970 = vmatmul.mubr.msk.bf16.vlgmr.msra.gmra.mrb[28].mxu0 %vm98_vm0, %v811_v48 }
0x1125   :  { %v864_v50 = vpop.f32.mrb[28].mxu0 }
0x1126   :  { %v865_v51 = vadd.f32 %v945_v49, %v864_v50  ;;  %v971_v52 = vpop.f32.mrb[29].mxu0 }
0x1127   :  { %v867_v53 = vpop.f32.mrb[30].mxu0 }
0x1128   :  { %v972_v54 = vpop.f32.mrb[31].mxu0  ;;  %v871_v39 = vsel %vm870_vm3, %v865_v51, -inf  ;;  %v882_v59 = vmul.f32 1.442695, %v865_v51 }
0x1129   :  { %872 = vmax.xlane.f32.xlu0 %v871_v39 }
0x11b6   :  { %v873_v55 = vpop.xlane.xlu0 %872 }
0x11b7   :  { %v874_v56 = vsub.f32 %v865_v51, %v873_v55 }
0x11b9   :  { %v875_v24 = vmul.f32 1.442695, %v874_v56 }
0x11bb   :  { %1053 = vpow2.f32 %v875_v24 }
0x11c5   :  { %v1054_v57 = vpop.eup %1053 }
0x11c6   :  { %v877_v58 = vsel %vm870_vm3, %v1054_v57, 0.0 }
0x11c7   :  { %878 = vadd.xlane.f32.xlu1 %v877_v58 }
0x1254   :  { %v879_v60 = vpop.xlane.xlu1 %878 }
0x1255   :  { %1055 = vrcp.f32 %v879_v60 }
0x1256   :  { %1057 = vpow2.f32 %v882_v59 }
0x125f   :  { %v1056_v61 = vpop.eup %1055 }
0x1260   :  { %v881_v62 = vmul.f32 %v1056_v61, %v1054_v57  ;;  %v1058_v1 = vpop.eup %1057 }
0x1262   :  { %v884_v2 = vsel %vm870_vm3, %v881_v62, %v865_v51 }
0x1263   :  { %v886_v3 = vsel %vm885_vm4, %v884_v2, %v1058_v1 }
0x1264   :  { %v888_v63 = vsel %vm887_vm5, %v886_v3, 0.0 }
0x1265   :  { %889 = vst [vmem:[#allocation5] sm:$0xff] %v888_v63 }
0x1266   :  { %1092 = shalt.err (!%p1089_p12)
}
0x1267   :  { %s1093_s18 = scalar_lea.hbm %s1437_s9, 128 }
0x1268   :  { %p1094_p13 = scmp.ne.s32.totalorder %s1437_s9, %s1093_s18  ;;  %p1097_p0 = scmp.lt.u32.totalorder %s1093_s18, %s1437_s9 }
0x126a   :  { %p1099_p1 = pnand %p1097_p0, %p1094_p13 }
0x126c   :  { %1102 = shalt.err (!%p1099_p1)
}
0x126d   :  { %899 = dma.vmem_to_hbm [thread:$0]  %s897_s7, 128, %s1437_s9, [#allocation4]  }
0x126e   :  { %1105 = dma.done.wait [#allocation4], 128  }
0x126f   :  { %1106 = vsyncadd [#allocation4], 4294967168 }
0x1270   :  { %903 = vsyncpa [#allocation3], 1 }
0x1271   :  { %904 = vsyncpa [#allocation4], 1 }

</bundles_post_ra>
